<compile_context>
chip_gen: v6e
topology: v6e:2x2x1
jax: 0.10.0
libtpu: 0.0.40
codegen_flags: <defaults>
</compile_context>

<pallas_src>
import functools

import numpy as np
import jax
import jax.numpy as jnp
from jax import lax
from jax.experimental import pallas as pl
from jax.experimental.pallas import tpu as pltpu

LABELS = ("contradiction", "entail", "neutral")
_LANES = 128  # pad the class axis to one full lane group


def _round_up(x, m):
    return ((x + m - 1) // m) * m


def _nli_head_kernel(x_ref, w_ref, b_ref, o_ref, p_ref):
    # x: (TB, D) bf16   w: (D, Lp) bf16   b: (1, Lp) f32
    # o: (TB, Lp) f32 log-probs           p: (TB, 1) i32 argmax
    x = x_ref[...]
    w = w_ref[...]
    b = b_ref[...]
    # nli_head: logits = x @ W^T + b.  Weight was pre-transposed to (D, Lp),
    # so this is a plain (M,K)x(K,N) MXU contraction with f32 accumulation.
    logits = jnp.dot(x, w, preferred_element_type=jnp.float32) + b

    # F.log_softmax(logits, dim=1), numerically stable, all in f32.  Padded
    # classes carry a -1e30 bias so they never win the max and exp() to 0.
    m = jnp.max(logits, axis=-1, keepdims=True)
    shifted = logits - m
    lse = jnp.log(jnp.sum(jnp.exp(shifted), axis=-1, keepdims=True))
    o_ref[...] = shifted - lse

    # Fused argmax: first lane attaining the row max (matches np/torch argmax
    # tie-breaking); pad lanes can never be the max.
    lp = logits.shape[-1]
    lane = lax.broadcasted_iota(jnp.int32, logits.shape, dimension=1)
    p_ref[...] = jnp.min(jnp.where(logits == m, lane, lp),
                         axis=-1, keepdims=True)


@functools.partial(jax.jit, static_argnames=("label_num",))
def nli_head_forward(cls_vecs, w_p, b_p, *, label_num):
    """cls_vecs: (B, D) f32 pooled [CLS] vectors;
    w_p: (D, 128) bf16 padded transposed Linear weight;
    b_p: (1, 128) f32 padded bias (-1e30 in pad lanes).
    Returns ((B, label_num) f32 log-probs, (B,) i32 argmax)."""
    B, D = cls_vecs.shape
    Lp = w_p.shape[1]

    # Batch tile: multiple of 16 (bf16 sublane tiling), up to 1024 rows to
    # amortize the ~0.35us per-grid-step overhead.  For large batches make
    # sure the grid has >= 2 parallel steps so v7x's 2 TensorCores both work.
    B16 = _round_up(max(B, 1), 16)
    if B16 <= 256:
        TB = B16
    else:
        TB = min(1024, _round_up((B16 + 1) // 2, 16))
    Bp = _round_up(B, TB)

    # bf16 activations for the matmul read (halves HBM traffic of x).
    x = cls_vecs.astype(jnp.bfloat16)
    if Bp != B:
        x = jnp.pad(x, ((0, Bp - B), (0, 0)))

    log_probs, pred = pl.pallas_call(
        _nli_head_kernel,
        out_shape=(jax.ShapeDtypeStruct((Bp, Lp), jnp.float32),
                   jax.ShapeDtypeStruct((Bp, 1), jnp.int32)),
        grid=(Bp // TB,),
        in_specs=[
            pl.BlockSpec((TB, D), lambda i: (i, 0)),
            # Grid-invariant blocks (block index never changes), so the
            # pipeline does not re-DMA the weight / bias across steps.
            pl.BlockSpec((D, Lp), lambda i: (0, 0)),
            pl.BlockSpec((1, Lp), lambda i: (0, 0)),
        ],
        out_specs=(
            pl.BlockSpec((TB, Lp), lambda i: (i, 0)),
            pl.BlockSpec((TB, 1), lambda i: (i, 0)),
        ),
        compiler_params=pltpu.CompilerParams(
            dimension_semantics=("parallel",)),
    )(x, w_p, b_p)

    return log_probs[:B, :label_num], pred[:B, 0]


class BertNLIModelPallas:
    """Synthetic stand-in for BertNLIModel: deterministic nli_head params,
    Pallas-fused linear + log_softmax + argmax, labels in forward()."""

    def __init__(self, vdim=768, label_num=3, batch_size=8, key=None):
        if key is None:
            key = jax.random.PRNGKey(0)
        kw, kb = jax.random.split(key)
        # nn.Linear(vdim, label_num): weight (label_num, vdim), bias (label_num,)
        bound = 1.0 / np.sqrt(vdim)
        self.weight = jax.random.uniform(
            kw, (label_num, vdim), jnp.float32, -bound, bound)
        self.bias = jax.random.uniform(
            kb, (label_num,), jnp.float32, -bound, bound)
        self.vdim = vdim
        self.label_num = label_num
        self.batch_size = batch_size  # interface parity; grid replaces the loop

        # Padded / transposed parameters built ONCE (not per forward call):
        #  * w_p: (D, 128) bf16, zeros in pad lanes -> lane-dense MXU RHS.
        #  * b_p: (1, 128) f32, -1e30 in pad lanes so they lose max / LSE.
        Lp = _LANES
        self.w_p = (jnp.zeros((vdim, Lp), jnp.float32)
                    .at[:, :label_num].set(self.weight.T)
                    .astype(jnp.bfloat16))
        self.b_p = (jnp.full((1, Lp), -1e30, jnp.float32)
                    .at[0, :label_num].set(self.bias))

    def ff(self, cls_vecs):
        log_probs, _ = nli_head_forward(
            cls_vecs, self.w_p, self.b_p, label_num=self.label_num)
        return log_probs

    def forward(self, cls_vecs):
        # Single device dispatch (grid tiles the batch), argmax fused in the
        # kernel, one host transfer -- replaces the per-batch loop + np.append.
        log_probs, pred = nli_head_forward(
            cls_vecs, self.w_p, self.b_p, label_num=self.label_num)
        all_probs = np.asarray(log_probs)
        labels = [LABELS[int(i)] for i in np.asarray(pred)]
        return labels, all_probs


if __name__ == "__main__":
    key = jax.random.PRNGKey(0)
    k_model, k_x = jax.random.split(key)

    B, VDIM, L = 8, 768, 3   # 'base' bert -> vdim=768, label_num=3
    model = BertNLIModelPallas(vdim=VDIM, label_num=L, batch_size=B, key=k_model)

    # Deterministic stand-in for BERT pooled [CLS] vectors.
    cls_vecs = jax.random.normal(k_x, (B, VDIM), jnp.float32)

    log_probs = model.ff(cls_vecs)
    jax.block_until_ready(log_probs)
    lp_np = np.asarray(log_probs)

    # Reference #1: full-f32 math (loose tolerance: kernel matmul is bf16-in).
    ref_f32 = jax.nn.log_softmax(cls_vecs @ model.weight.T + model.bias, axis=1)
    np.testing.assert_allclose(lp_np, np.asarray(ref_f32), rtol=5e-2, atol=5e-2)

    # Reference #2: same bf16-input / f32-accumulate recipe as the kernel.
    ref_logits = jnp.dot(cls_vecs.astype(jnp.bfloat16),
                         model.weight.T.astype(jnp.bfloat16),
                         preferred_element_type=jnp.float32) + model.bias
    ref_bf16 = jax.nn.log_softmax(ref_logits, axis=1)
    np.testing.assert_allclose(lp_np, np.asarray(ref_bf16), rtol=1e-3, atol=1e-3)

    labels, all_probs = model.forward(cls_vecs)
    assert len(labels) == B and all_probs.shape == (B, L)
    # Fused argmax must agree with the log-probs the kernel produced.
    assert labels == [LABELS[int(np.argmax(p))] for p in all_probs]

    print("KERNEL_OK")
</pallas_src>

<mosaic_0001>
module attributes {stable_mosaic.version = 11 : i64} {
  func.func @_nli_head_kernel(%arg0: i32, %arg1: memref<16x768xbf16, #tpu.memory_space<vmem>>, %arg2: memref<768x128xbf16, #tpu.memory_space<vmem>>, %arg3: memref<1x128xf32, #tpu.memory_space<vmem>>, %arg4: memref<16x128xf32, #tpu.memory_space<vmem>>, %arg5: memref<16x1xi32, #tpu.memory_space<vmem>>) attributes {dimension_semantics = [#tpu.dimension_semantics<parallel>], iteration_bounds = array<i64: 1>, scalar_prefetch = 0 : i64, scratch_operands = 0 : i64, tpu.core_type = #tpu.core_type<tc>, window_params = [{transform_indices = @transform_0, window_bounds = array<i64: 16, 768>}, {pipeline_mode = #tpu.pipeline_mode<synchronous>, transform_indices = @transform_1, window_bounds = array<i64: 768, 128>}, {pipeline_mode = #tpu.pipeline_mode<synchronous>, transform_indices = @transform_2, window_bounds = array<i64: 1, 128>}, {transform_indices = @transform_3, window_bounds = array<i64: 16, 128>}, {transform_indices = @transform_4, window_bounds = array<i64: 16, 1>}]} {
    %c0 = arith.constant 0 : index
    %c0_0 = arith.constant 0 : index
    %0 = vector.load %arg1[%c0, %c0_0] : memref<16x768xbf16, #tpu.memory_space<vmem>>, vector<16x768xbf16>
    %c0_1 = arith.constant 0 : index
    %c0_2 = arith.constant 0 : index
    %1 = vector.load %arg2[%c0_1, %c0_2] : memref<768x128xbf16, #tpu.memory_space<vmem>>, vector<768x128xbf16>
    %c0_3 = arith.constant 0 : index
    %c0_4 = arith.constant 0 : index
    %2 = vector.load %arg3[%c0_3, %c0_4] : memref<1x128xf32, #tpu.memory_space<vmem>>, vector<1x128xf32>
    %cst = arith.constant dense<0.000000e+00> : vector<16x128xf32>
    %3 = tpu.matmul %0, %1, %cst {dimension_numbers = #tpu.dot_dimension_numbers<[1], [0], [0], [1], [0, 0, 1, 1], [], []>} : vector<16x768xbf16>, vector<768x128xbf16>, vector<16x128xf32> -> vector<16x128xf32>
    %4 = vector.broadcast %2 : vector<1x128xf32> to vector<16x128xf32>
    %5 = arith.addf %3, %4 : vector<16x128xf32>
    %cst_5 = arith.constant dense<0xFF800000> : vector<16xf32>
    %6 = vector.multi_reduction <maximumf>, %5, %cst_5 [1] : vector<16x128xf32> to vector<16xf32>
    %7 = vector.shape_cast %6 : vector<16xf32> to vector<16x1xf32>
    %8 = vector.broadcast %7 : vector<16x1xf32> to vector<16x128xf32>
    %9 = arith.subf %5, %8 : vector<16x128xf32>
    %10 = math.exp %9 : vector<16x128xf32>
    %cst_6 = arith.constant dense<0.000000e+00> : vector<16xf32>
    %11 = vector.multi_reduction <add>, %10, %cst_6 [1] : vector<16x128xf32> to vector<16xf32>
    %12 = vector.shape_cast %11 : vector<16xf32> to vector<16x1xf32>
    %13 = math.log %12 : vector<16x1xf32>
    %14 = vector.broadcast %13 : vector<16x1xf32> to vector<16x128xf32>
    %15 = arith.subf %9, %14 : vector<16x128xf32>
    %c0_7 = arith.constant 0 : index
    %c0_8 = arith.constant 0 : index
    %16 = vector.load %arg4[%c0_7, %c0_8] : memref<16x128xf32, #tpu.memory_space<vmem>>, vector<16x128xf32>
    tpu.vector_store %arg4[%c0_7, %c0_8], %15 {strides = array<i32>} : memref<16x128xf32, #tpu.memory_space<vmem>>, vector<16x128xf32>,
    %17 = tpu.iota {dimensions = array<i32: 1>} : vector<16x128xi32>
    %18 = vector.broadcast %7 : vector<16x1xf32> to vector<16x128xf32>
    %19 = arith.cmpf oeq, %5, %18 : vector<16x128xf32>
    %c128_i32 = arith.constant 128 : i32
    %20 = vector.broadcast %c128_i32 : i32 to vector<16x128xi32>
    %21 = arith.select %19, %17, %20 : vector<16x128xi1>, vector<16x128xi32>
    %cst_9 = arith.constant dense<2147483647> : vector<16xi32>
    %22 = vector.multi_reduction <minsi>, %21, %cst_9 [1] : vector<16x128xi32> to vector<16xi32>
    %23 = vector.shape_cast %22 : vector<16xi32> to vector<16x1xi32>
    %c0_10 = arith.constant 0 : index
    %c0_11 = arith.constant 0 : index
    %24 = vector.load %arg5[%c0_10, %c0_11] : memref<16x1xi32, #tpu.memory_space<vmem>>, vector<16x1xi32>
    tpu.vector_store %arg5[%c0_10, %c0_11], %23 {strides = array<i32>} : memref<16x1xi32, #tpu.memory_space<vmem>>, vector<16x1xi32>,
    return
  }
  func.func @transform_0(%arg0: i32) -> (i32, i32) {
    %c0_i32 = arith.constant 0 : i32
    %c0_i32_0 = arith.constant 0 : i32
    return %arg0, %c0_i32 : i32, i32
  }
  func.func @transform_1(%arg0: i32) -> (i32, i32) {
    %c0_i32 = arith.constant 0 : i32
    %c0_i32_0 = arith.constant 0 : i32
    %c0_i32_1 = arith.constant 0 : i32
    return %c0_i32, %c0_i32_0 : i32, i32
  }
  func.func @transform_2(%arg0: i32) -> (i32, i32) {
    %c0_i32 = arith.constant 0 : i32
    %c0_i32_0 = arith.constant 0 : i32
    %c0_i32_1 = arith.constant 0 : i32
    return %c0_i32, %c0_i32_0 : i32, i32
  }
  func.func @transform_3(%arg0: i32) -> (i32, i32) {
    %c0_i32 = arith.constant 0 : i32
    %c0_i32_0 = arith.constant 0 : i32
    return %arg0, %c0_i32 : i32, i32
  }
  func.func @transform_4(%arg0: i32) -> (i32, i32) {
    %c0_i32 = arith.constant 0 : i32
    %c0_i32_0 = arith.constant 0 : i32
    return %arg0, %c0_i32 : i32, i32
  }
}

</mosaic_0001>

<bundles_post_ra>
// kernel: nli_head_forward.1
= control target key start
LH: loop header
LB: loop body
LE: loop exit
PB: predicated region body
PF: predicated region fallthrough
CT: control target
= control target key end

     0   :  { %10 = vsyncpa [#allocation3], 0  ;;  %s860_s15 = smov [#allocation2]   ;;  %s924_s0 = inlined_call_operand.vmem [shape: bf16[16,768], index: 0, kind: input, shape index: {}]   ;;  %s925_s1 = inlined_call_operand.hbm [shape: bf16[768,128], index: 1, kind: input, shape index: {}]   ;;  %s926_s2 = inlined_call_operand.vmem [shape: f32[1,128], index: 2, kind: input, shape index: {}]   ;;  %s927_s3 = inlined_call_operand.vmem [shape: f32[16,128], index: 3, kind: output, shape index: {0}]   ;;  %s928_s4 = inlined_call_operand.vmem [shape: s32[16,1], index: 4, kind: output, shape index: {1}]  }
   0x1   :  { %s18_s16 = sshll.u32 %s860_s15, 4  ;;  %s19_s16 = int_to_ptr.vmem [resolvable:$true] %s18_s16 }
   0x2   :  { %s846_s17 = scalar_lea.vmem %s19_s16, 6144  ;;  %p851_p1 = scmp.lt.s32.totalorder %s19_s16, %s19_s16 }
   0x3   :  { %p847_p0 = scmp.ne.s32.totalorder %s19_s16, %s846_s17  ;;  %p852_p2 = scmp.lt.s32.totalorder %s846_s17, %s846_s17 }
   0x5   :  { %p853_p3 = por %p852_p2, %p851_p1 }
   0x7   :  { %p854_p4 = pnand %p853_p3, %p847_p0 }
   0x9   :  { %857 = shalt.err (!%p854_p4)
}
   0xa   :  { %s861_s18 = smov 64   ;;  %s862_s19 = smov 4  }
   0xb   :  { %24 = dma.hbm_to_vmem [thread:$0]  %s925_s1, 6144, %s19_s16, [#allocation3], %s861_s18, %s861_s18, %s862_s19  }
   0xc   :  { %858 = dma.done.wait [#allocation3], 6144  }
   0xd   :  { %859 = vsyncadd [#allocation3], 4294961152  ;;  %v773_v0 = vld [vmem:[#allocation2 + $0x78] sm:$0xff]   ;;  %v777_v4 = vld [vmem:[#allocation2 + $0x70] sm:$0xff]   ;;  %vm637_vm4 = vcmask 7168  }
   0xe   :  { %v774_v1 = vld [vmem:[#allocation2 + $0x38] sm:$0xff]   ;;  %704 = vmatprep.subr.bf16.mxu0 %v773_v0  ;;  %v778_v5 = vld [vmem:[#allocation2 + $0x30] sm:$0xff]   ;;  %v781_v8 = vld [vmem:[#allocation2 + $0x68] sm:$0xff]  }
   0xf   :  { %v775_v2 = vld [vmem:[#allocation2 + $0xf8] sm:$0xff]   ;;  %705 = vmatpush3.bf16.msra.mxu0 %v774_v1  ;;  %v779_v6 = vld [vmem:[#allocation2 + $0xf0] sm:$0xff]   ;;  %v782_v9 = vld [vmem:[#allocation2 + $0x28] sm:$0xff]  }
  0x10   :  { %v776_v3 = vld [vmem:[#allocation2 + $0xb8] sm:$0xff]   ;;  %726 = vmatprep.subr.bf16.mxu1 %v775_v2  ;;  %706 = vmatprep.subr.bf16.mxu0 %v777_v4  ;;  %v780_v7 = vld [vmem:[#allocation2 + $0xb0] sm:$0xff]   ;;  %v783_v10 = vld [vmem:[#allocation2 + $0xe8] sm:$0xff]  }
  0x11   :  { %727 = vmatpush3.bf16.msra.mxu1 %v776_v3  ;;  %v784_v11 = vld [vmem:[#allocation2 + $0xa8] sm:$0xff]   ;;  %v785_v12 = vld [vmem:[#allocation2 + $0x60] sm:$0xff]   ;;  %v789_v16 = vld [vmem:[#allocation2 + $0x58] sm:$0xff]  }
  0x12   :  { %728 = vmatprep.subr.bf16.mxu1 %v779_v6  ;;  %v786_v13 = vld [vmem:[#allocation2 + $0x20] sm:$0xff]   ;;  %v790_v17 = vld [vmem:[#allocation2 + $0x18] sm:$0xff]   ;;  %v793_v20 = vld [vmem:[#allocation2 + $0x50] sm:$0xff]  }
  0x13   :  { %707 = vmatpush3.bf16.msra.mxu0 %v778_v5  ;;  %v787_v14 = vld [vmem:[#allocation2 + $0xe0] sm:$0xff]   ;;  %v791_v18 = vld [vmem:[#allocation2 + $0xd8] sm:$0xff]   ;;  %v794_v21 = vld [vmem:[#allocation2 + $0x10] sm:$0xff]  }
  0x14   :  { %708 = vmatprep.subr.bf16.mxu0 %v781_v8  ;;  %v788_v15 = vld [vmem:[#allocation2 + $0xa0] sm:$0xff]   ;;  %v792_v19 = vld [vmem:[#allocation2 + $0x98] sm:$0xff]   ;;  %v795_v22 = vld [vmem:[#allocation2 + $0xd0] sm:$0xff]  }
  0x15   :  { %729 = vmatpush3.bf16.msra.mxu1 %v780_v7  ;;  %v796_v23 = vld [vmem:[#allocation2 + $0x90] sm:$0xff]   ;;  %v797_v24 = vld [vmem:[#allocation2 + $0x48] sm:$0xff]   ;;  %v801_v28 = vld [vmem:[#allocation2 + $0x40] sm:$0xff]  }
  0x16   :  { %730 = vmatprep.subr.bf16.mxu1 %v783_v10  ;;  %v798_v25 = vld [vmem:[#allocation2 + $0x8] sm:$0xff]   ;;  %v802_v29 = vld [vmem:[#allocation2] sm:$0xff]   ;;  %v808_v34 = vld [vmem:[#allocation2 + $0x178] sm:$0xff]  }
  0x17   :  { %709 = vmatpush3.bf16.msra.mxu0 %v782_v9  ;;  %v799_v26 = vld [vmem:[#allocation2 + $0xc8] sm:$0xff]   ;;  %v803_v30 = vld [vmem:[#allocation2 + $0xc0] sm:$0xff]   ;;  %v812_v37 = vld [vmem:[#allocation2 + $0x138] sm:$0xff]  }
  0x18   :  { %710 = vmatprep.subr.bf16.mxu0 %v785_v12  ;;  %v800_v27 = vld [vmem:[#allocation2 + $0x88] sm:$0xff]   ;;  %v804_v31 = vld [vmem:[%s924_s0] ss:$24 sps:$4 sm:$0xff]   ;;  %v806_v32 = vld [vmem:[%s924_s0 + $0x4] ss:$24 sps:$4 sm:$0xff]  }
  0x19   :  { %731 = vmatpush3.bf16.msra.mxu1 %v784_v11  ;;  %v807_v33 = vld [vmem:[#allocation2 + $0x80] sm:$0xff]   ;;  %490 = vmatprep.mubr.bf16.mxu0 %v806_v32  ;;  %v813_v38 = vld [vmem:[#allocation2 + $0x170] sm:$0xff]   ;;  %v815_v40 = vld [vmem:[#allocation2 + $0x168] sm:$0xff]  }
  0x1a   :  { %732 = vmatprep.subr.bf16.mxu1 %v787_v14  ;;  %v809_v35 = vld [vmem:[%s924_s0 + $0x8] ss:$24 sps:$4 sm:$0xff]   ;;  %v811_v36 = vld [vmem:[%s924_s0 + $0xc] ss:$24 sps:$4 sm:$0xff]   ;;  %v814_v39 = vld [vmem:[#allocation2 + $0x130] sm:$0xff]  }
  0x1b   :  { %711 = vmatpush3.bf16.msra.mxu0 %v786_v13  ;;  %531 = vmatprep.mubr.bf16.mxu1 %v811_v36  ;;  %v816_v41 = vld [vmem:[#allocation2 + $0x128] sm:$0xff]   ;;  %v817_v42 = vld [vmem:[#allocation2 + $0x160] sm:$0xff]   ;;  %v819_v44 = vld [vmem:[#allocation2 + $0x158] sm:$0xff]  }
  0x1c   :  { %712 = vmatprep.subr.bf16.mxu0 %v789_v16  ;;  %v818_v43 = vld [vmem:[#allocation2 + $0x120] sm:$0xff]   ;;  %v820_v45 = vld [vmem:[#allocation2 + $0x118] sm:$0xff]   ;;  %v821_v46 = vld [vmem:[#allocation2 + $0x150] sm:$0xff]  }
  0x1d   :  { %733 = vmatpush3.bf16.msra.mxu1 %v788_v15  ;;  %v829_v47 = vld [vmem:[%s924_s0 + $0x14] ss:$24 sps:$4 sm:$0xff]   ;;  %v825_v51 = vld [vmem:[#allocation2 + $0x140] sm:$0xff]   ;;  %v827_v53 = vld [vmem:[%s924_s0 + $0x10] ss:$24 sps:$4 sm:$0xff]   ;;  %v603_v15 = vlaneseq }
  0x1e   :  { %734 = vmatprep.subr.bf16.mxu1 %v791_v18  ;;  %v822_v48 = vld [vmem:[#allocation2 + $0x110] sm:$0xff]   ;;  %v823_v49 = vld [vmem:[#allocation2 + $0x148] sm:$0xff]   ;;  %v826_v52 = vld [vmem:[#allocation2 + $0x100] sm:$0xff]  }
  0x1f   :  { %713 = vmatpush3.bf16.msra.mxu0 %v790_v17  ;;  %v824_v50 = vld [vmem:[#allocation2 + $0x108] sm:$0xff]   ;;  %v649_v60 = vld [vmem:[%s926_s2] ss:$0 sm:$0xff]  ;;  %v604_v16 = vand.u32 127, %v603_v15 }
  0x20   :  { %714 = vmatprep.subr.bf16.mxu0 %v793_v20 }
  0x21   :  { %735 = vmatpush3.bf16.msra.mxu1 %v792_v19 }
  0x22   :  { %736 = vmatprep.subr.bf16.mxu1 %v795_v22 }
  0x23   :  { %715 = vmatpush3.bf16.msra.mxu0 %v794_v21 }
  0x24   :  { %716 = vmatprep.subr.bf16.mxu0 %v797_v24 }
  0x25   :  { %737 = vmatpush3.bf16.msra.mxu1 %v796_v23 }
  0x26   :  { %738 = vmatprep.subr.bf16.mxu1 %v799_v26 }
  0x27   :  { %717 = vmatpush3.bf16.msra.mxu0 %v798_v25 }
  0x28   :  { %718 = vmatprep.subr.bf16.mxu0 %v801_v28 }
  0x29   :  { %739 = vmatpush3.bf16.msra.mxu1 %v800_v27 }
  0x2a   :  { %740 = vmatprep.subr.bf16.mxu1 %v803_v30 }
  0x2b   :  { %719 = vmatpush3.bf16.msra.mxu0 %v802_v29 }
  0x2c   :  { %748 = vmatprep.subr.bf16.mxu0 %v808_v34 }
  0x2d   :  { %741 = vmatpush3.bf16.msra.mxu1 %v807_v33 }
  0x2e   :  { %491 = vmatmul.mubr.bf16.vlgmr.msra.gmra.mxu0 %v804_v31 }
  0x2f   :  { %749 = vmatpush3.bf16.msra.mxu0 %v812_v37  ;;  %572 = vmatprep.mubr.bf16.mxu0 %v829_v47 }
  0x30   :  { %532 = vmatmul.mubr.bf16.vlgmr.msra.gmra.mxu1 %v809_v35  ;;  %750 = vmatprep.subr.bf16.mxu0 %v813_v38 }
  0x33   :  { %751 = vmatpush3.bf16.msra.mxu0 %v814_v39 }
  0x34   :  { %752 = vmatprep.subr.bf16.mxu0 %v815_v40 }
  0x37   :  { %753 = vmatpush3.bf16.msra.mxu0 %v816_v41 }
  0x38   :  { %754 = vmatprep.subr.bf16.mxu0 %v817_v42 }
  0x3b   :  { %755 = vmatpush3.bf16.msra.mxu0 %v818_v43 }
  0x3c   :  { %756 = vmatprep.subr.bf16.mxu0 %v819_v44 }
  0x3f   :  { %757 = vmatpush3.bf16.msra.mxu0 %v820_v45 }
  0x40   :  { %758 = vmatprep.subr.bf16.mxu0 %v821_v46 }
  0x43   :  { %759 = vmatpush3.bf16.msra.mxu0 %v822_v48 }
  0x44   :  { %760 = vmatprep.subr.bf16.mxu0 %v823_v49 }
  0x47   :  { %761 = vmatpush3.bf16.msra.mxu0 %v824_v50 }
  0x48   :  { %762 = vmatprep.subr.bf16.mxu0 %v825_v51 }
  0x4b   :  { %763 = vmatpush3.bf16.msra.mxu0 %v826_v52 }
  0x4e   :  { %573 = vmatmul.mubr.bf16.vlgmr.msra.gmra.mxu0 %v827_v53 }
  0xee   :  { %v720_v54 = vpop.f32.mrf.mxu0 }
  0xf0   :  { %v721_v55 = vpop.f32.mrf.mxu0  ;;  %v742_v56 = vpop.f32.mrf.mxu1 }
  0xf1   :  { %v722_v59 = vadd.f32 %v721_v55, %v720_v54 }
  0xf2   :  { %v723_v57 = vpop.f32.mrf.mxu0  ;;  %v743_v58 = vpop.f32.mrf.mxu1 }
  0xf3   :  { %v493_v63 = vadd.f32 %v722_v59, %v649_v60  ;;  %v744_v0 = vadd.f32 %v743_v58, %v742_v56 }
  0xf4   :  { %v724_v61 = vpop.f32.mrf.mxu0  ;;  %v745_v62 = vpop.f32.mrf.mxu1 }
  0xf5   :  { %v725_v1 = vadd.f32 %v724_v61, %v723_v57  ;;  %v534_v5 = vadd.f32 %v744_v0, %v493_v63 }
  0xf6   :  { %v746_v2 = vpop.f32.mrf.mxu1 }
  0xf7   :  { %v496_v6 = vadd.f32 %v725_v1, %v649_v60  ;;  %v747_v7 = vadd.f32 %v746_v2, %v745_v62 }
  0xf9   :  { %v537_v12 = vadd.f32 %v747_v7, %v496_v6 }
 0x10e   :  { %v764_v3 = vpop.f32.mrf.mxu0 }
 0x110   :  { %v765_v4 = vpop.f32.mrf.mxu0 }
 0x111   :  { %v766_v8 = vadd.f32 %v765_v4, %v764_v3 }
 0x112   :  { %v767_v9 = vpop.f32.mrf.mxu0 }
 0x113   :  { %v575_v10 = vadd.f32 %v766_v8, %v534_v5 }
 0x114   :  { %v768_v11 = vpop.f32.mrf.mxu0 }
 0x115   :  { %v769_v13 = vadd.f32 %v768_v11, %v767_v9  ;;  %581 = vmax.xlane.f32.xlu0 %v575_v10 }
 0x117   :  { %v578_v14 = vadd.f32 %v769_v13, %v537_v12 }
 0x119   :  { %583 = vmax.xlane.f32.xlu0 %v578_v14 }
 0x19e   :  { %v582_v17 = vpop.xlane.xlu0 %581 }
 0x19f   :  { %v585_v18 = vsub.f32 %v575_v10, %v582_v17  ;;  %vm605_vm0 = vcmp.eq.f32.partialorder %v575_v10, %v582_v17 }
 0x1a0   :  { %v607_v19 = vsel %vm605_vm0, %v604_v16, 128 }
 0x1a1   :  { %v587_v20 = vmul.f32 1.442695, %v585_v18  ;;  %v610_v21 = vshra.s32 %v607_v19, 16  ;;  %v609_v31 = vand.u32 65535, %v607_v19 }
 0x1a2   :  { %v584_v22 = vpop.xlane.xlu0 %583 }
 0x1a3   :  { %830 = vpow2.f32 %v587_v20  ;;  %v586_v23 = vsub.f32 %v578_v14, %v584_v22  ;;  %vm606_vm1 = vcmp.eq.f32.partialorder %v578_v14, %v584_v22  ;;  %v612_v24 = vcvt.s32.f32 %v610_v21 }
 0x1a4   :  { %v608_v25 = vsel %vm606_vm1, %v604_v16, 128  ;;  %v611_v33 = vcvt.s32.f32 %v609_v31 }
 0x1a5   :  { %v589_v26 = vmul.f32 1.442695, %v586_v23  ;;  %613 = vmin.xlane.f32.xlu1 %v612_v24  ;;  %v624_v27 = vshra.s32 %v608_v25, 16  ;;  %v623_v34 = vand.u32 65535, %v608_v25 }
 0x1a7   :  { %832 = vpow2.f32 %v589_v26  ;;  %v626_v28 = vcvt.s32.f32 %v624_v27  ;;  %v625_v37 = vcvt.s32.f32 %v623_v34 }
 0x1a9   :  { %627 = vmin.xlane.f32.xlu1 %v626_v28 }
 0x1b0   :  { %v831_v29 = vpop.eup %830 }
 0x1b1   :  { %591 = vadd.xlane.f32.xlu0 %v831_v29 }
 0x1b4   :  { %v833_v30 = vpop.eup %832 }
 0x1b5   :  { %593 = vadd.xlane.f32.xlu1 %v833_v30 }
 0x22e   :  { %v614_v32 = vpop.xlane.xlu1 %613 }
 0x22f   :  { %vm615_vm2 = vcmp.eq.f32.partialorder %v612_v24, %v614_v32  ;;  %v620_v47 = vcvt.f32.s32 %v614_v32 }
 0x230   :  { %v616_v35 = vsel %vm615_vm2, %v611_v33, inf }
 0x231   :  { %617 = vmin.xlane.f32.xlu0 %v616_v35  ;;  %v621_v49 = vshll.u32 %v620_v47, 16 }
 0x232   :  { %v628_v36 = vpop.xlane.xlu1 %627 }
 0x233   :  { %vm629_vm3 = vcmp.eq.f32.partialorder %v626_v28, %v628_v36  ;;  %v634_v50 = vcvt.f32.s32 %v628_v36 }
 0x234   :  { %v630_v38 = vsel %vm629_vm3, %v625_v37, inf }
 0x235   :  { %631 = vmin.xlane.f32.xlu1 %v630_v38  ;;  %v635_v54 = vshll.u32 %v634_v50, 16 }
 0x23a   :  { %v592_v39 = vpop.xlane.xlu0 %591 }
 0x23b   :  { %834 = vlog2.f32 %v592_v39 }
 0x23e   :  { %v594_v40 = vpop.xlane.xlu1 %593 }
 0x23f   :  { %836 = vlog2.f32 %v594_v40 }
 0x248   :  { %v835_v41 = vpop.eup %834 }
 0x249   :  { %v596_v42 = vmul.f32 0.6931472, %v835_v41 }
 0x24b   :  { %v599_v43 = vsub.f32 %v585_v18, %v596_v42 }
 0x24c   :  { %v837_v44 = vpop.eup %836 }
 0x24d   :  { %601 = vst [vmem:[%s927_s3] sm:$0xff] %v599_v43  ;;  %v598_v45 = vmul.f32 0.6931472, %v837_v44 }
 0x24f   :  { %v600_v46 = vsub.f32 %v586_v23, %v598_v45 }
 0x251   :  { %602 = vst [vmem:[%s927_s3 + $0x8] sm:$0xff] %v600_v46 }
 0x2ba   :  { %v618_v48 = vpop.xlane.xlu0 %617 }
 0x2bb   :  { %v619_v51 = vcvt.f32.s32 %v618_v48 }
 0x2bd   :  { %v622_v52 = vadd.s32 %v621_v49, %v619_v51 }
 0x2be   :  { %v632_v53 = vpop.xlane.xlu1 %631 }
 0x2bf   :  { %638 = vst.msk [vmem:[%s928_s4] sm:$0xff] %vm637_vm4, %v622_v52  ;;  %v633_v55 = vcvt.f32.s32 %v632_v53 }
 0x2c1   :  { %v636_v56 = vadd.s32 %v635_v54, %v633_v55 }
 0x2c3   :  { %639 = vst.msk [vmem:[%s928_s4 + $0x8] sm:$0xff] %vm637_vm4, %v636_v56 }
 0x2c4   :  { %648 = vsyncpa [#allocation3], 1 }

</bundles_post_ra>
